<compile_context>
chip_gen: v5e
topology: v5e:2x2
jax: 0.10.0
libtpu: 0.0.40
codegen_flags: <defaults>
</compile_context>

<pallas_src>
import jax
import jax.numpy as jnp
from jax import lax
from jax.experimental import pallas as pl
from jax.experimental.pallas import tpu as pltpu


_CHUNK = 1024  # rows processed per in-kernel compute chunk (bounds VMEM temps)


def _make_kernel(tc: int, n_chunks: int):
    """Build the kernel for a (TB, ND) input block, TB == tc * n_chunks."""

    def _process(rows, x_ref, fold_ref, out_ref):
        x = x_ref[rows, :]                       # (tc, ND) f32
        fold = fold_ref[...]                     # (ND, N)  bf16, exact 0/1

        # Exact 3-term bf16 decomposition of x: hi + mid + lo == x bit-exactly
        # (each residual is exact by Sterbenz; the last residual fits in bf16).
        hi = x.astype(jnp.bfloat16)
        r1 = x - hi.astype(jnp.float32)
        mid = r1.astype(jnp.bfloat16)
        lo = (r1 - mid.astype(jnp.float32)).astype(jnp.bfloat16)

        # 3 single-pass bf16 MXU matmuls, f32 accumulate -> f32-exact D-sum.
        s = (jnp.dot(hi, fold, preferred_element_type=jnp.float32)
             + jnp.dot(mid, fold, preferred_element_type=jnp.float32)
             + jnp.dot(lo, fold, preferred_element_type=jnp.float32))

        t = 10.0 * (s - 1.0) - 1.0               # (tc, N) logits

        # Numerically stable log-softmax over the N board positions (lane axis).
        m = jnp.max(t, axis=-1, keepdims=True)
        z = t - m
        lse = jnp.log(jnp.sum(jnp.exp(z), axis=-1, keepdims=True))
        out_ref[rows, :] = (z - lse).astype(out_ref.dtype)

    def kernel(x_ref, fold_ref, out_ref):
        if n_chunks == 1:
            _process(pl.ds(0, tc), x_ref, fold_ref, out_ref)
        else:
            def body(c, carry):
                r0 = pl.multiple_of(c * tc, tc)
                _process(pl.ds(r0, tc), x_ref, fold_ref, out_ref)
                return carry
            lax.fori_loop(0, n_chunks, body, 0)

    return kernel


def _pick_tb(B: int, tb_max: int) -> int:
    """Pick the batch-tile height: big tiles, >=2 grid steps when possible."""
    if B <= 2 * _CHUNK:
        if B > 16:
            # ~half the batch, rounded up to a sublane multiple -> 2 grid steps.
            return (-(-B // 2) + 7) // 8 * 8
        return B                                  # full-extent block (tiny batch)
    half = -(-B // 2)
    tb = -(-half // _CHUNK) * _CHUNK              # multiple of the compute chunk
    return min(tb_max, tb)


def mechanical_forward(obs, *, tb_max=8192):
    """obs: (B, H, W, D) float array -> (B, H, W) log-softmax over the board."""
    B, H, W, D = obs.shape
    N = H * W
    ND = N * D

    # Free (contiguous, no data movement) reshape to a lane-dense 2D layout.
    x = obs.reshape(B, ND)

    # fold[i, n] = 1 iff i // D == n : x @ fold == obs.sum(-1) per position.
    # 0/1 is exact in bf16, so the matmul side of the D-sum is exact.
    fold = (
        jnp.arange(ND, dtype=jnp.int32)[:, None] // D
        == jnp.arange(N, dtype=jnp.int32)[None, :]
    ).astype(jnp.bfloat16)

    TB = _pick_tb(B, tb_max)
    if TB % _CHUNK == 0:
        tc, n_chunks = _CHUNK, TB // _CHUNK
    else:
        tc, n_chunks = TB, 1

    out = pl.pallas_call(
        _make_kernel(tc, n_chunks),
        out_shape=jax.ShapeDtypeStruct((B, N), jnp.float32),
        grid=(pl.cdiv(B, TB),),                   # ragged last block is fine
        in_specs=[
            pl.BlockSpec((TB, ND), lambda b: (b, 0)),
            pl.BlockSpec((ND, N), lambda b: (0, 0)),   # constant fold matrix
        ],
        out_specs=pl.BlockSpec((TB, N), lambda b: (b, 0)),
        compiler_params=pltpu.CompilerParams(
            dimension_semantics=("parallel",),
            vmem_limit_bytes=40 * 1024 * 1024,
        ),
    )(x, fold)

    return out.reshape(B, H, W)


def mechanical_reference(obs):
    """Pure-JAX reference matching the PyTorch forward exactly."""
    B = obs.shape[0]
    x = 10.0 * (obs.sum(-1) - 1.0) - 1.0
    x = x.reshape(B, -1)
    x = jax.nn.log_softmax(x, axis=-1)
    return x.reshape(obs.shape[:-1])


if __name__ == "__main__":
    key = jax.random.PRNGKey(0)
    B, boardsize, D = 2, 8, 4                  # obs: (B, boardsize, boardsize, D)
    obs = jax.random.uniform(key, (B, boardsize, boardsize, D), dtype=jnp.float32)

    out = jax.block_until_ready(mechanical_forward(obs))
    ref = mechanical_reference(obs)

    assert out.shape == (B, boardsize, boardsize)
    assert jnp.allclose(out, ref, atol=1e-4, rtol=1e-4), "mismatch vs reference"

    # Larger, non-divisible batch: exercises the multi-step grid, the in-kernel
    # chunk loop, and the ragged last block (no pad / slice copies).
    obs2 = jax.random.uniform(
        jax.random.PRNGKey(1), (2500, boardsize, boardsize, D), dtype=jnp.float32
    )
    out2 = jax.block_until_ready(mechanical_forward(obs2))
    ref2 = mechanical_reference(obs2)
    assert out2.shape == (2500, boardsize, boardsize)
    assert jnp.allclose(out2, ref2, atol=1e-4, rtol=1e-4), "mismatch (ragged batch)"

    print("KERNEL_OK")
</pallas_src>

<mosaic_0001>
module attributes {stable_mosaic.version = 11 : i64} {
  func.func @kernel(%arg0: i32, %arg1: memref<2x256xf32, #tpu.memory_space<vmem>>, %arg2: memref<256x64xbf16, #tpu.memory_space<vmem>>, %arg3: memref<2x64xf32, #tpu.memory_space<vmem>>) attributes {dimension_semantics = [#tpu.dimension_semantics<parallel>], iteration_bounds = array<i64: 1>, scalar_prefetch = 0 : i64, scratch_operands = 0 : i64, tpu.core_type = #tpu.core_type<tc>, window_params = [{transform_indices = @transform_0, window_bounds = array<i64: 2, 256>}, {pipeline_mode = #tpu.pipeline_mode<synchronous>, transform_indices = @transform_1, window_bounds = array<i64: 256, 64>}, {transform_indices = @transform_2, window_bounds = array<i64: 2, 64>}]} {
    %c0 = arith.constant 0 : index
    %c0_0 = arith.constant 0 : index
    %0 = vector.load %arg1[%c0, %c0_0] : memref<2x256xf32, #tpu.memory_space<vmem>>, vector<2x256xf32>
    %c0_1 = arith.constant 0 : index
    %c0_2 = arith.constant 0 : index
    %1 = vector.load %arg2[%c0_1, %c0_2] : memref<256x64xbf16, #tpu.memory_space<vmem>>, vector<256x64xbf16>
    %2 = arith.truncf %0 : vector<2x256xf32> to vector<2x256xbf16>
    %3 = arith.extf %2 : vector<2x256xbf16> to vector<2x256xf32>
    %4 = arith.subf %0, %3 : vector<2x256xf32>
    %5 = arith.truncf %4 : vector<2x256xf32> to vector<2x256xbf16>
    %6 = arith.extf %5 : vector<2x256xbf16> to vector<2x256xf32>
    %7 = arith.subf %4, %6 : vector<2x256xf32>
    %8 = arith.truncf %7 : vector<2x256xf32> to vector<2x256xbf16>
    %cst = arith.constant dense<0.000000e+00> : vector<2x64xf32>
    %9 = tpu.matmul %2, %1, %cst {dimension_numbers = #tpu.dot_dimension_numbers<[1], [0], [0], [1], [0, 0, 1, 1], [], []>} : vector<2x256xbf16>, vector<256x64xbf16>, vector<2x64xf32> -> vector<2x64xf32>
    %cst_3 = arith.constant dense<0.000000e+00> : vector<2x64xf32>
    %10 = tpu.matmul %5, %1, %cst_3 {dimension_numbers = #tpu.dot_dimension_numbers<[1], [0], [0], [1], [0, 0, 1, 1], [], []>} : vector<2x256xbf16>, vector<256x64xbf16>, vector<2x64xf32> -> vector<2x64xf32>
    %11 = arith.addf %9, %10 : vector<2x64xf32>
    %cst_4 = arith.constant dense<0.000000e+00> : vector<2x64xf32>
    %12 = tpu.matmul %8, %1, %cst_4 {dimension_numbers = #tpu.dot_dimension_numbers<[1], [0], [0], [1], [0, 0, 1, 1], [], []>} : vector<2x256xbf16>, vector<256x64xbf16>, vector<2x64xf32> -> vector<2x64xf32>
    %13 = arith.addf %11, %12 : vector<2x64xf32>
    %cst_5 = arith.constant 1.000000e+00 : f32
    %14 = vector.broadcast %cst_5 : f32 to vector<2x64xf32>
    %15 = arith.subf %13, %14 : vector<2x64xf32>
    %cst_6 = arith.constant 1.000000e+01 : f32
    %16 = vector.broadcast %cst_6 : f32 to vector<2x64xf32>
    %17 = arith.mulf %16, %15 : vector<2x64xf32>
    %cst_7 = arith.constant 1.000000e+00 : f32
    %18 = vector.broadcast %cst_7 : f32 to vector<2x64xf32>
    %19 = arith.subf %17, %18 : vector<2x64xf32>
    %cst_8 = arith.constant dense<0xFF800000> : vector<2xf32>
    %20 = vector.multi_reduction <maximumf>, %19, %cst_8 [1] : vector<2x64xf32> to vector<2xf32>
    %21 = vector.shape_cast %20 : vector<2xf32> to vector<2x1xf32>
    %22 = vector.broadcast %21 : vector<2x1xf32> to vector<2x64xf32>
    %23 = arith.subf %19, %22 : vector<2x64xf32>
    %24 = math.exp %23 : vector<2x64xf32>
    %cst_9 = arith.constant dense<0.000000e+00> : vector<2xf32>
    %25 = vector.multi_reduction <add>, %24, %cst_9 [1] : vector<2x64xf32> to vector<2xf32>
    %26 = vector.shape_cast %25 : vector<2xf32> to vector<2x1xf32>
    %27 = math.log %26 : vector<2x1xf32>
    %28 = vector.broadcast %27 : vector<2x1xf32> to vector<2x64xf32>
    %29 = arith.subf %23, %28 : vector<2x64xf32>
    %c0_10 = arith.constant 0 : index
    %c0_11 = arith.constant 0 : index
    %30 = vector.load %arg3[%c0_10, %c0_11] : memref<2x64xf32, #tpu.memory_space<vmem>>, vector<2x64xf32>
    tpu.vector_store %arg3[%c0_10, %c0_11], %29 {strides = array<i32>} : memref<2x64xf32, #tpu.memory_space<vmem>>, vector<2x64xf32>,
    return
  }
  func.func @transform_0(%arg0: i32) -> (i32, i32) {
    %c0_i32 = arith.constant 0 : i32
    %c0_i32_0 = arith.constant 0 : i32
    return %arg0, %c0_i32 : i32, i32
  }
  func.func @transform_1(%arg0: i32) -> (i32, i32) {
    %c0_i32 = arith.constant 0 : i32
    %c0_i32_0 = arith.constant 0 : i32
    %c0_i32_1 = arith.constant 0 : i32
    return %c0_i32, %c0_i32_0 : i32, i32
  }
  func.func @transform_2(%arg0: i32) -> (i32, i32) {
    %c0_i32 = arith.constant 0 : i32
    %c0_i32_0 = arith.constant 0 : i32
    return %arg0, %c0_i32 : i32, i32
  }
}

</mosaic_0001>

<bundles_post_ra>
// kernel: tpu_custom_call.1
= control target key start
LH: loop header
LB: loop body
LE: loop exit
PB: predicated region body
PF: predicated region fallthrough
CT: control target
= control target key end

     0   :  { %s524_s0 = inlined_call_operand.vmem [shape: f32[2,256], index: 0, kind: input, shape index: {}]   ;;  %s525_s1 = inlined_call_operand.vmem [shape: bf16[256,64], index: 1, kind: input, shape index: {}]   ;;  %s526_s2 = inlined_call_operand.hbm [shape: f32[2,64], index: 2, kind: output, shape index: {}]  }
   0x1   :  { %v379_v0 = vld [vmem:[%s525_s1 + $0x38] sm:$0xff]  ;;  %v444_v2 = vld [vmem:[%s525_s1 + $0x30] sm:$0xff]  ;;  %v12_v4 = vld [vmem:[%s524_s0] sm:$0xf] }
   0x2   :  { %v387_v1 = vld [vmem:[%s525_s1 + $0x78] sm:$0xff]  ;;  %187 = vmatpush.bf16.msra.mxu0 %v379_v0  ;;  %v449_v3 = vld [vmem:[%s525_s1 + $0x70] sm:$0xff]  ;;  %220 = vmatpush.bf16.msra.mxu2 %v379_v0 }
   0x3   :  { %200 = vmatpush.bf16.msra.mxu1 %v387_v1  ;;  %233 = vmatpush.bf16.msra.mxu3 %v387_v1 }
   0x4   :  { %7 = vsyncpa [#allocation3], 0  ;;  %v459_v5 = vld [vmem:[%s525_s1 + $0x28] sm:$0xff]  ;;  %46 = vst [vmem:[#allocation1] ss:$4 sm:$0xff] %v12_v4  ;;  %v473_v7 = vld [vmem:[%s525_s1 + $0x20] sm:$0xff] }
   0x5   :  { %v464_v6 = vld [vmem:[%s525_s1 + $0x68] sm:$0xff]  ;;  %v478_v8 = vld [vmem:[%s525_s1 + $0x60] sm:$0xff]  ;;  %v375_v11 = vld [vmem:[%s525_s1 + $0x18] sm:$0xff]  ;;  %vm57_vm0 = vcmask 1041408   ;;  %vm276_vm1 = vcmask 517120   ;;  %s297_s17 = sshll.u32 %s526_s2, 4  ;;  %s298_s17 = int_to_ptr.hbm [resolvable:$true] %s297_s17 }
   0x6   :  { %188 = vmatpush.bf16.msra.mxu0 %v444_v2  ;;  %221 = vmatpush.bf16.msra.mxu2 %v444_v2  ;;  %v383_v12 = vld [vmem:[%s525_s1 + $0x58] sm:$0xff]  ;;  %v374_v16 = vld [vmem:[%s525_s1 + $0x10] sm:$0xff]  ;;  %v373_v21 = vld [vmem:[%s525_s1 + $0x8] sm:$0xff] }
   0x7   :  { %201 = vmatpush.bf16.msra.mxu1 %v449_v3  ;;  %234 = vmatpush.bf16.msra.mxu3 %v449_v3  ;;  %v382_v17 = vld [vmem:[%s525_s1 + $0x50] sm:$0xff]  ;;  %v381_v22 = vld [vmem:[%s525_s1 + $0x48] sm:$0xff]  ;;  %v372_v23 = vld [vmem:[%s525_s1] sm:$0xff] }
   0x8   :  { %v380_v24 = vld [vmem:[%s525_s1 + $0x40] sm:$0xff]  ;;  %s419_s1 = smov [#allocation2]  }
   0x9   :  { %s295_s14 = sshll.u32 %s419_s1, 4  ;;  %s296_s14 = int_to_ptr.vmem [resolvable:$true] %s295_s14 }
   0xa   :  { %189 = vmatpush.bf16.msra.mxu0 %v459_v5  ;;  %222 = vmatpush.bf16.msra.mxu2 %v459_v5 }
   0xb   :  { %202 = vmatpush.bf16.msra.mxu1 %v464_v6  ;;  %235 = vmatpush.bf16.msra.mxu3 %v464_v6  ;;  %v47_v9 = vld.sshfl [vmem:[#allocation1] sm:$0xff pattern:$0x73625140]  ;;  %v48_v10 = vld.sshfl [vmem:[#allocation1 + $0x8] sm:$0xff pattern:$0x73625140] }
   0xc   :  { %v51_v13 = vpack.c.bf16 %v48_v10, %v47_v9 }
   0xe   :  { %190 = vmatpush.bf16.msra.mxu0 %v473_v7  ;;  %223 = vmatpush.bf16.msra.mxu2 %v473_v7  ;;  %v52_v14 = vunpack.c.l.bf16 %v51_v13  ;;  %v53_v15 = vunpack.c.h.bf16 %v51_v13  ;;  %v214_v25 = vunpack.c.l.b16 %v51_v13  ;;  %v215_v26 = vunpack.c.h.b16 %v51_v13 }
   0xf   :  { %203 = vmatpush.bf16.msra.mxu1 %v478_v8  ;;  %236 = vmatpush.bf16.msra.mxu3 %v478_v8 }
  0x10   :  { %v56_v18 = vrot.slane %v53_v15, 6  ;;  %v216_v30 = vpack.c.b16 %v214_v25, %v214_v25  ;;  %v217_v31 = vpack.c.b16 %v215_v26, %v215_v26 }
  0x12   :  { %191 = vmatpush.bf16.msra.mxu0 %v375_v11  ;;  %224 = vmatpush.bf16.msra.mxu2 %v375_v11  ;;  %v58_v19 = vsel %vm57_vm0, %v52_v14, %v56_v18 }
  0x13   :  { %204 = vmatpush.bf16.msra.mxu1 %v383_v12  ;;  %237 = vmatpush.bf16.msra.mxu3 %v383_v12  ;;  %v60_v20 = vsub.f32 %v12_v4, %v58_v19 }
  0x15   :  { %62 = vst [vmem:[#allocation1] ss:$4 sm:$0xff] %v60_v20 }
  0x16   :  { %192 = vmatpush.bf16.msra.mxu0 %v374_v16  ;;  %225 = vmatpush.bf16.msra.mxu2 %v374_v16 }
  0x17   :  { %205 = vmatpush.bf16.msra.mxu1 %v382_v17  ;;  %238 = vmatpush.bf16.msra.mxu3 %v382_v17 }
  0x1a   :  { %193 = vmatpush.bf16.msra.mxu0 %v373_v21  ;;  %226 = vmatpush.bf16.msra.mxu2 %v373_v21 }
  0x1b   :  { %206 = vmatpush.bf16.msra.mxu1 %v381_v22  ;;  %239 = vmatpush.bf16.msra.mxu3 %v381_v22 }
  0x1c   :  { %v63_v27 = vld.sshfl [vmem:[#allocation1] sm:$0xff pattern:$0x73625140]  ;;  %v64_v28 = vld.sshfl [vmem:[#allocation1 + $0x8] sm:$0xff pattern:$0x73625140] }
  0x1d   :  { %v67_v29 = vpack.c.bf16 %v64_v28, %v63_v27 }
  0x1e   :  { %194 = vmatpush.bf16.msra.mxu0 %v372_v23  ;;  %227 = vmatpush.bf16.msra.mxu2 %v372_v23 }
  0x1f   :  { %207 = vmatpush.bf16.msra.mxu1 %v380_v24  ;;  %240 = vmatpush.bf16.msra.mxu3 %v380_v24  ;;  %v68_v32 = vunpack.c.l.bf16 %v67_v29  ;;  %v69_v33 = vunpack.c.h.bf16 %v67_v29  ;;  %v85_v34 = vunpack.c.l.b16 %v67_v29  ;;  %v86_v35 = vunpack.c.h.b16 %v67_v29 }
  0x21   :  { %v72_v36 = vrot.slane %v69_v33, 6  ;;  %v87_v37 = vpack.c.b16 %v85_v34, %v85_v34  ;;  %v88_v38 = vpack.c.b16 %v86_v35, %v86_v35  ;;  %228 = vmatmul.bf16.vlgmr.msra.gmra.mxu2 %v216_v30 }
  0x22   :  { %246 = vmatpush.bf16.msrb.mxu0 %v379_v0  ;;  %241 = vmatmul.bf16.vlgmr.msra.gmra.mxu3 %v217_v31 }
  0x23   :  { %259 = vmatpush.bf16.msrb.mxu1 %v387_v1  ;;  %v73_v39 = vsel %vm57_vm0, %v68_v32, %v72_v36  ;;  %195 = vmatmul.bf16.vlgmr.msra.gmra.mxu0 %v87_v37 }
  0x24   :  { %208 = vmatmul.bf16.vlgmr.msra.gmra.mxu1 %v88_v38  ;;  %v75_v40 = vsub.f32 %v60_v20, %v73_v39 }
  0x26   :  { %247 = vmatpush.bf16.msrb.mxu0 %v444_v2  ;;  %77 = vst [vmem:[#allocation1] ss:$4 sm:$0xff] %v75_v40 }
  0x27   :  { %260 = vmatpush.bf16.msrb.mxu1 %v449_v3 }
  0x2a   :  { %248 = vmatpush.bf16.msrb.mxu0 %v459_v5 }
  0x2b   :  { %261 = vmatpush.bf16.msrb.mxu1 %v464_v6 }
  0x2d   :  { %v78_v41 = vld.sshfl [vmem:[#allocation1] sm:$0xff pattern:$0x73625140]  ;;  %v79_v42 = vld.sshfl [vmem:[#allocation1 + $0x8] sm:$0xff pattern:$0x73625140] }
  0x2e   :  { %249 = vmatpush.bf16.msrb.mxu0 %v473_v7  ;;  %v82_v43 = vpack.c.bf16 %v78_v41, %v78_v41  ;;  %v83_v44 = vpack.c.bf16 %v79_v42, %v79_v42 }
  0x2f   :  { %262 = vmatpush.bf16.msrb.mxu1 %v478_v8 }
  0x32   :  { %250 = vmatpush.bf16.msrb.mxu0 %v375_v11 }
  0x33   :  { %263 = vmatpush.bf16.msrb.mxu1 %v383_v12 }
  0x36   :  { %251 = vmatpush.bf16.msrb.mxu0 %v374_v16 }
  0x37   :  { %264 = vmatpush.bf16.msrb.mxu1 %v382_v17 }
  0x3a   :  { %252 = vmatpush.bf16.msrb.mxu0 %v373_v21 }
  0x3b   :  { %265 = vmatpush.bf16.msrb.mxu1 %v381_v22 }
  0x3e   :  { %253 = vmatpush.bf16.msrb.mxu0 %v372_v23 }
  0x3f   :  { %266 = vmatpush.bf16.msrb.mxu1 %v380_v24 }
  0x41   :  { %254 = vmatmul.bf16.vlgmr.msrb.gmra.mxu0 %v82_v43 }
  0x42   :  { %267 = vmatmul.bf16.vlgmr.msrb.gmra.mxu1 %v83_v44 }
  0xa0   :  { %v196_v45 = vpop.f32.mrf.mxu0 }
  0xa1   :  { %v209_v46 = vpop.f32.mrf.mxu1 }
  0xa2   :  { %v210_v53 = vadd.f32 %v209_v46, %v196_v45 }
  0xa4   :  { %v229_v47 = vpop.f32.mrf.mxu2 }
  0xa5   :  { %v242_v48 = vpop.f32.mrf.mxu3  ;;  %v230_v54 = vadd.f32 %v229_v47, %v210_v53 }
  0xa7   :  { %v243_v57 = vadd.f32 %v242_v48, %v230_v54 }
  0xa8   :  { %v198_v49 = vpop.f32.mrf.mxu0 }
  0xa9   :  { %v211_v50 = vpop.f32.mrf.mxu1 }
  0xac   :  { %v231_v51 = vpop.f32.mrf.mxu2 }
  0xad   :  { %v244_v52 = vpop.f32.mrf.mxu3 }
  0xbe   :  { %v255_v55 = vpop.f32.mrf.mxu0 }
  0xbf   :  { %v268_v56 = vpop.f32.mrf.mxu1 }
  0xc0   :  { %v269_v58 = vadd.f32 %v268_v56, %v255_v55 }
  0xc2   :  { %v272_v59 = vadd.f32 %v269_v58, %v243_v57 }
  0xc4   :  { %v370_v60 = vadd.f32 -1.0, %v272_v59 }
  0xc6   :  { %v274_v61 = vmul.f32 10.0, %v370_v60  ;;  %v257_v62 = vpop.f32.mrf.mxu0 }
  0xc7   :  { %v270_v63 = vpop.f32.mrf.mxu1 }
  0xc8   :  { %v371_v0 = vadd.f32 -1.0, %v274_v61 }
  0xca   :  { %v277_v1 = vsel %vm276_vm1, %v371_v0, -inf }
  0xcb   :  { %278 = vmax.xlane.f32.xlu0 %v277_v1 }
 0x13e   :  { %v279_v2 = vpop.xlane.xlu0 %278 }
 0x13f   :  { %v280_v3 = vsub.f32 %v371_v0, %v279_v2 }
 0x141   :  { %v281_v4 = vmul.f32 1.442695, %v280_v3 }
 0x143   :  { %389 = vpow2.f32 %v281_v4 }
 0x149   :  { %v390_v5 = vpop.eup %389 }
 0x14a   :  { %v283_v6 = vsel %vm276_vm1, %v390_v5, 0.0 }
 0x14b   :  { %284 = vadd.xlane.f32.xlu0 %v283_v6 }
 0x1be   :  { %v285_v7 = vpop.xlane.xlu0 %284 }
 0x1bf   :  { %391 = vlog2.f32 %v285_v7 }
 0x1c5   :  { %v392_v8 = vpop.eup %391 }
 0x1c6   :  { %v287_v9 = vmul.f32 0.6931472, %v392_v8 }
 0x1c8   :  { %v288_v10 = vsub.f32 %v280_v3, %v287_v9 }
 0x1ca   :  { %289 = vst.msk [vmem:[#allocation2] sm:$0x3] %vm276_vm1, %v288_v10 }
 0x1cb   :  { %300 = dma.vmem_to_hbm [thread:$0]  %s296_s14, 32, %s298_s17, [#allocation3]  }
 0x1cc   :  { %417 = dma.done.wait [#allocation3], 32  }
 0x1cd   :  { %418 = vsyncadd [#allocation3], 4294967264 }
 0x1ce   :  { %305 = vsyncpa [#allocation3], 1 }

</bundles_post_ra>
